<compile_context>
chip_gen: v7x
topology: tpu7x:2x2x1
jax: 0.10.0
libtpu: 0.0.40
codegen_flags: <defaults>
</compile_context>

<pallas_src>
import numpy as np
import jax
import jax.numpy as jnp
from jax.experimental import pallas as pl
from jax.experimental.pallas import tpu as pltpu


# ----------------------- graph construction (numpy, mirrors reference) -----------------
def k_adjacency(A, k, with_self=False, self_factor=1):
    I = np.eye(len(A), dtype=A.dtype)
    if k == 0:
        return I
    Ak = np.minimum(np.linalg.matrix_power(A + I, k), 1) \
       - np.minimum(np.linalg.matrix_power(A + I, k - 1), 1)
    if with_self:
        Ak += self_factor * I
    return Ak


def normalize_adjacency_matrix(A):
    node_degrees = A.sum(-1)
    degs_inv_sqrt = np.power(node_degrees, -0.5)
    norm_degs_matrix = np.eye(len(node_degrees)) * degs_inv_sqrt
    return (norm_degs_matrix @ A @ norm_degs_matrix).astype(np.float32)


def build_spatial_temporal_graph(A_binary, window_size):
    A_with_I = A_binary + np.eye(len(A_binary), dtype=A_binary.dtype)
    return np.tile(A_with_I, (window_size, window_size)).copy()


# ----------------------- UnfoldTemporalWindows (pure-JAX, used only by the reference) ---
def unfold_temporal(x, window_size, window_stride, window_dilation):
    # x: (N, C, T, V)  ->  (N, C, T_out, window_size * V)
    N, C, T, V = x.shape
    pad = (window_size + (window_size - 1) * (window_dilation - 1) - 1) // 2
    xp = jnp.pad(x, ((0, 0), (0, 0), (pad, pad), (0, 0)))
    T_pad = T + 2 * pad
    eff = (window_size - 1) * window_dilation + 1
    T_out = (T_pad - eff) // window_stride + 1
    wins = [
        xp[:, :, w * window_dilation: w * window_dilation + (T_out - 1) * window_stride + 1: window_stride, :]
        for w in range(window_size)
    ]
    x_w = jnp.stack(wins, axis=3)                       # (N, C, T_out, W, V)
    return x_w.reshape(N, C, T_out, window_size * V)    # (N, C, T_out, W*V)


# ----------------------- Pallas kernel --------------------------------------------------
def make_kernel(*, N, C_e, W, V, T_out, stride, dilation):
    NT = N * T_out

    def kernel(x_ref, b_ref, s1_ref, c2_ref, s2_ref, o_ref):
        # x_ref  : (N, C_e, Tp, V)   raw T-padded input, f32 (full-array block)
        # b_ref  : (C_e*W*V, O_e*W*V) bf16   fused (multi-scale graph agg + BN1-scaled 1x1 conv)
        # s1_ref : (1, O_e*W*V)       f32    BN1 shift (bias folded), per (o,w,v) column
        # c2_ref : (O_e*W*V, O*V)     bf16   fused (BN2-scaled out_conv (x) I_V)
        # s2_ref : (1, O*V)           f32    BN2 shift (bias folded), per (p,v) column
        # o_ref  : (N*T_out, O*V)     f32    rows (n,t), cols (p,v)  -> 128-lane dense store
        x4 = x_ref[...]                                    # (N, C_e, Tp, V)

        # ---- UnfoldTemporalWindows, fused in-kernel -------------------------------------
        # Build the per-token window-feature matrix x_unf[(n,t), (c,w,v)] with only
        # sublane-axis slices, leading-dim reshapes and ONE lane concat (no minor-dim
        # reshapes / transposes that Mosaic might not lower).
        pieces = []
        for c in range(C_e):
            for w in range(W):
                start = w * dilation
                if stride == 1:
                    blk = x4[:, c, start:start + T_out, :]                      # (N, T_out, V)
                else:
                    # TODO(synk): strided value slice untested on Mosaic; test uses stride=1.
                    blk = x4[:, c, start:start + (T_out - 1) * stride + 1:stride, :]
                pieces.append(blk.reshape(NT, V))          # leading-dim merge only (safe)
        x_unf = jnp.concatenate(pieces, axis=-1)           # (N*T_out, C_e*W*V)

        # ---- fused multi-scale graph aggregation + 1x1 channel mix + BN1 + ReLU ---------
        xb = x_unf.astype(jnp.bfloat16)
        z = jnp.dot(xb, b_ref[...], preferred_element_type=jnp.float32)   # (NT, O_e*W*V)
        h = jnp.maximum(z + s1_ref[...], 0.0)

        # ---- fused out_conv Conv3d(1,W,1) + BN2 ------------------------------------------
        hb = h.astype(jnp.bfloat16)
        out = jnp.dot(hb, c2_ref[...], preferred_element_type=jnp.float32)  # (NT, O*V)
        o_ref[...] = (out + s2_ref[...]).astype(o_ref.dtype)

    return kernel


# ----------------------- wrapper ---------------------------------------------------------
def ms_g3d_forward(x, A_full, w1_flat, b1, g1, be1, m1, v1,
                   w2_3d, b2, g2, be2, m2, v2,
                   *, num_scales, window_size, window_stride, window_dilation, eps=1e-5):
    N, C_e, T, V = x.shape
    S, W = num_scales, window_size
    WV = W * V
    O_e = w1_flat.shape[0]
    O = w2_3d.shape[0]

    pad = (W + (W - 1) * (window_dilation - 1) - 1) // 2
    eff = (W - 1) * window_dilation + 1
    xp = jnp.pad(x, ((0, 0), (0, 0), (pad, pad), (0, 0)))          # (N, C_e, Tp, V)
    Tp = T + 2 * pad
    T_out = (Tp - eff) // window_stride + 1
    NT = N * T_out

    # ---- host-precomputed fused operators (constant size in T, tiny one-time cost) ------
    scale1 = g1 / jnp.sqrt(v1 + eps)                               # (O_e,)
    scale2 = g2 / jnp.sqrt(v2 + eps)                               # (O,)

    # B[(c,u), (o,u')] = sum_s (w1*scale1)[o,(s,c)] * A[s,u',u]   (u,u' are joint (w,v) indices)
    W1s = (w1_flat * scale1[:, None]).reshape(O_e, S, C_e)
    A_r = A_full.reshape(S, WV, WV)
    B = jnp.einsum('osc,svu->cuov', W1s, A_r).reshape(C_e * WV, O_e * WV)
    s1row = jnp.repeat(be1 + (b1 - m1) * scale1, WV)[None, :]      # (1, O_e*W*V), (o,w,v) order

    # C2[(o,w,v), (p,v')] = (w2*scale2)[p,o,w] * I_V[v,v']
    w2s = w2_3d * scale2[:, None, None]                            # (O, O_e, W)
    C2 = jnp.einsum('pow,vu->owvpu', w2s,
                    jnp.eye(V, dtype=jnp.float32)).reshape(O_e * W * V, O * V)
    s2row = jnp.repeat(be2 + (b2 - m2) * scale2, V)[None, :]       # (1, O*V), (p,v) order

    kernel = make_kernel(N=N, C_e=C_e, W=W, V=V, T_out=T_out,
                         stride=window_stride, dilation=window_dilation)

    out_flat = pl.pallas_call(
        kernel,
        out_shape=jax.ShapeDtypeStruct((NT, O * V), jnp.float32),
        grid=(1,),
        in_specs=[
            pl.BlockSpec((N, C_e, Tp, V), lambda i: (0, 0, 0, 0)),
            pl.BlockSpec((C_e * WV, O_e * WV), lambda i: (0, 0)),
            pl.BlockSpec((1, O_e * WV), lambda i: (0, 0)),
            pl.BlockSpec((O_e * WV, O * V), lambda i: (0, 0)),
            pl.BlockSpec((1, O * V), lambda i: (0, 0)),
        ],
        out_specs=pl.BlockSpec((NT, O * V), lambda i: (0, 0)),
        compiler_params=pltpu.CompilerParams(dimension_semantics=("arbitrary",)),
    )(xp, B.astype(jnp.bfloat16), s1row, C2.astype(jnp.bfloat16), s2row)

    # Rows are (n, t), columns are (o, v): only a tiny reshape + transpose in XLA outside
    # the kernel (no extra HBM pass of any significance).
    return out_flat.reshape(N, T_out, O, V).transpose(0, 2, 1, 3)


# ----------------------- pure-JAX reference (mirrors PyTorch graph) ----------------------
def ms_g3d_reference(x, A_full, w1_flat, b1, g1, be1, m1, v1,
                     w2_3d, b2, g2, be2, m2, v2,
                     *, num_scales, window_size, window_stride, window_dilation, eps=1e-5):
    N, C_e, T, V = x.shape
    S, W = num_scales, window_size
    WV = W * V
    O_e = w1_flat.shape[0]

    xu = unfold_temporal(x, W, window_stride, window_dilation)          # (N, C, T, W*V)
    agg = jnp.einsum('vu,nctu->nctv', A_full, xu)                       # (N, C, T, S*WV)
    agg = agg.reshape(N, C_e, T, S, WV).transpose(0, 3, 1, 2, 4).reshape(N, S * C_e, T, WV)
    z = jnp.einsum('oc,nctv->notv', w1_flat, agg) + b1[None, :, None, None]
    z = (z - m1[None, :, None, None]) / jnp.sqrt(v1[None, :, None, None] + eps) \
        * g1[None, :, None, None] + be1[None, :, None, None]
    h = jnp.maximum(z, 0.0)                                             # ReLU (GCN act)
    h5 = h.reshape(N, O_e, T, W, V)
    out = jnp.einsum('pow,notwv->nptv', w2_3d, h5) + b2[None, :, None, None]
    out = (out - m2[None, :, None, None]) / jnp.sqrt(v2[None, :, None, None] + eps) \
        * g2[None, :, None, None] + be2[None, :, None, None]
    return out


# ----------------------- main -------------------------------------------------------------
if __name__ == "__main__":
    # small shapes consistent with the module
    N, C_in, T, V = 2, 3, 8, 8
    OUT_CH = 16
    S = 2            # num_scales
    W = 3            # window_size
    STRIDE, DIL = 1, 1
    C_e = C_in       # embed_channels_in  (embed_factor == 1)
    O_e = OUT_CH     # embed_channels_out (in_channels == 3 branch)
    O = OUT_CH
    WV = W * V
    EPS = 1e-5

    # binary adjacency: chain graph over V joints
    A_binary = np.zeros((V, V), dtype=np.float32)
    for i in range(V - 1):
        A_binary[i, i + 1] = 1.0
        A_binary[i + 1, i] = 1.0
    A_large = build_spatial_temporal_graph(A_binary, W)                  # (WV, WV)
    A_scales = np.concatenate(
        [normalize_adjacency_matrix(k_adjacency(A_large, k, with_self=True)) for k in range(S)]
    )                                                                    # (S*WV, WV)

    key = jax.random.PRNGKey(0)
    ks = jax.random.split(key, 16)
    x = jax.random.normal(ks[0], (N, C_in, T, V), jnp.float32)

    A_res = jax.random.uniform(ks[1], (S * WV, WV), jnp.float32, -1e-6, 1e-6)
    A_full = jnp.asarray(A_scales) + A_res                               # (S*WV, WV)

    # MLP (Conv2d 1x1 + BN) params
    w1_flat = 0.1 * jax.random.normal(ks[2], (O_e, S * C_e), jnp.float32)
    b1 = 0.1 * jax.random.normal(ks[3], (O_e,), jnp.float32)
    g1 = 1.0 + 0.1 * jax.random.normal(ks[4], (O_e,), jnp.float32)
    be1 = 0.1 * jax.random.normal(ks[5], (O_e,), jnp.float32)
    m1 = 0.1 * jax.random.normal(ks[6], (O_e,), jnp.float32)
    v1 = 1.0 + 0.1 * jax.random.uniform(ks[7], (O_e,), jnp.float32)

    # out_conv (Conv3d kernel (1, W, 1)) + out_bn params
    w2_3d = 0.1 * jax.random.normal(ks[8], (O, O_e, W), jnp.float32)
    b2 = 0.1 * jax.random.normal(ks[9], (O,), jnp.float32)
    g2 = 1.0 + 0.1 * jax.random.normal(ks[10], (O,), jnp.float32)
    be2 = 0.1 * jax.random.normal(ks[11], (O,), jnp.float32)
    m2 = 0.1 * jax.random.normal(ks[12], (O,), jnp.float32)
    v2 = 1.0 + 0.1 * jax.random.uniform(ks[13], (O,), jnp.float32)

    kwargs = dict(num_scales=S, window_size=W, window_stride=STRIDE,
                  window_dilation=DIL, eps=EPS)

    out = ms_g3d_forward(x, A_full, w1_flat, b1, g1, be1, m1, v1,
                         w2_3d, b2, g2, be2, m2, v2, **kwargs)
    out = jax.block_until_ready(out)

    ref = ms_g3d_reference(x, A_full, w1_flat, b1, g1, be1, m1, v1,
                           w2_3d, b2, g2, be2, m2, v2, **kwargs)
    ref = jax.block_until_ready(ref)

    assert out.shape == ref.shape == (N, OUT_CH, T, V), (out.shape, ref.shape)
    # bf16 MXU operands (f32 accumulation): tolerance loosened per review guidance.
    np.testing.assert_allclose(np.asarray(out), np.asarray(ref), rtol=3e-2, atol=3e-2)
    print("KERNEL_OK")
</pallas_src>

<mosaic_0001>
module attributes {stable_mosaic.version = 11 : i64} {
  func.func @kernel(%arg0: i32, %arg1: memref<2x3x10x8xf32, #tpu.memory_space<vmem>>, %arg2: memref<72x384xbf16, #tpu.memory_space<vmem>>, %arg3: memref<1x384xf32, #tpu.memory_space<vmem>>, %arg4: memref<384x128xbf16, #tpu.memory_space<vmem>>, %arg5: memref<1x128xf32, #tpu.memory_space<vmem>>, %arg6: memref<16x128xf32, #tpu.memory_space<vmem>>) attributes {dimension_semantics = [#tpu.dimension_semantics<arbitrary>], iteration_bounds = array<i64: 1>, scalar_prefetch = 0 : i64, scratch_operands = 0 : i64, tpu.core_type = #tpu.core_type<tc>, window_params = [{pipeline_mode = #tpu.pipeline_mode<synchronous>, transform_indices = @transform_0, window_bounds = array<i64: 2, 3, 10, 8>}, {pipeline_mode = #tpu.pipeline_mode<synchronous>, transform_indices = @transform_1, window_bounds = array<i64: 72, 384>}, {pipeline_mode = #tpu.pipeline_mode<synchronous>, transform_indices = @transform_2, window_bounds = array<i64: 1, 384>}, {pipeline_mode = #tpu.pipeline_mode<synchronous>, transform_indices = @transform_3, window_bounds = array<i64: 384, 128>}, {pipeline_mode = #tpu.pipeline_mode<synchronous>, transform_indices = @transform_4, window_bounds = array<i64: 1, 128>}, {pipeline_mode = #tpu.pipeline_mode<synchronous>, transform_indices = @transform_5, window_bounds = array<i64: 16, 128>}]} {
    %c0 = arith.constant 0 : index
    %c0_0 = arith.constant 0 : index
    %c0_1 = arith.constant 0 : index
    %c0_2 = arith.constant 0 : index
    %0 = vector.load %arg1[%c0, %c0_0, %c0_1, %c0_2] : memref<2x3x10x8xf32, #tpu.memory_space<vmem>>, vector<2x3x10x8xf32>
    %1 = vector.extract_strided_slice %0 {offsets = [0, 0, 0, 0], sizes = [2, 1, 8, 8], strides = [1, 1, 1, 1]} : vector<2x3x10x8xf32> to vector<2x1x8x8xf32>
    %2 = vector.shape_cast %1 : vector<2x1x8x8xf32> to vector<2x8x8xf32>
    %3 = vector.shape_cast %2 : vector<2x8x8xf32> to vector<16x8xf32>
    %4 = vector.extract_strided_slice %0 {offsets = [0, 0, 1, 0], sizes = [2, 1, 8, 8], strides = [1, 1, 1, 1]} : vector<2x3x10x8xf32> to vector<2x1x8x8xf32>
    %5 = vector.shape_cast %4 : vector<2x1x8x8xf32> to vector<2x8x8xf32>
    %6 = vector.shape_cast %5 : vector<2x8x8xf32> to vector<16x8xf32>
    %7 = vector.extract_strided_slice %0 {offsets = [0, 0, 2, 0], sizes = [2, 1, 8, 8], strides = [1, 1, 1, 1]} : vector<2x3x10x8xf32> to vector<2x1x8x8xf32>
    %8 = vector.shape_cast %7 : vector<2x1x8x8xf32> to vector<2x8x8xf32>
    %9 = vector.shape_cast %8 : vector<2x8x8xf32> to vector<16x8xf32>
    %10 = vector.extract_strided_slice %0 {offsets = [0, 1, 0, 0], sizes = [2, 1, 8, 8], strides = [1, 1, 1, 1]} : vector<2x3x10x8xf32> to vector<2x1x8x8xf32>
    %11 = vector.shape_cast %10 : vector<2x1x8x8xf32> to vector<2x8x8xf32>
    %12 = vector.shape_cast %11 : vector<2x8x8xf32> to vector<16x8xf32>
    %13 = vector.extract_strided_slice %0 {offsets = [0, 1, 1, 0], sizes = [2, 1, 8, 8], strides = [1, 1, 1, 1]} : vector<2x3x10x8xf32> to vector<2x1x8x8xf32>
    %14 = vector.shape_cast %13 : vector<2x1x8x8xf32> to vector<2x8x8xf32>
    %15 = vector.shape_cast %14 : vector<2x8x8xf32> to vector<16x8xf32>
    %16 = vector.extract_strided_slice %0 {offsets = [0, 1, 2, 0], sizes = [2, 1, 8, 8], strides = [1, 1, 1, 1]} : vector<2x3x10x8xf32> to vector<2x1x8x8xf32>
    %17 = vector.shape_cast %16 : vector<2x1x8x8xf32> to vector<2x8x8xf32>
    %18 = vector.shape_cast %17 : vector<2x8x8xf32> to vector<16x8xf32>
    %19 = vector.extract_strided_slice %0 {offsets = [0, 2, 0, 0], sizes = [2, 1, 8, 8], strides = [1, 1, 1, 1]} : vector<2x3x10x8xf32> to vector<2x1x8x8xf32>
    %20 = vector.shape_cast %19 : vector<2x1x8x8xf32> to vector<2x8x8xf32>
    %21 = vector.shape_cast %20 : vector<2x8x8xf32> to vector<16x8xf32>
    %22 = vector.extract_strided_slice %0 {offsets = [0, 2, 1, 0], sizes = [2, 1, 8, 8], strides = [1, 1, 1, 1]} : vector<2x3x10x8xf32> to vector<2x1x8x8xf32>
    %23 = vector.shape_cast %22 : vector<2x1x8x8xf32> to vector<2x8x8xf32>
    %24 = vector.shape_cast %23 : vector<2x8x8xf32> to vector<16x8xf32>
    %25 = vector.extract_strided_slice %0 {offsets = [0, 2, 2, 0], sizes = [2, 1, 8, 8], strides = [1, 1, 1, 1]} : vector<2x3x10x8xf32> to vector<2x1x8x8xf32>
    %26 = vector.shape_cast %25 : vector<2x1x8x8xf32> to vector<2x8x8xf32>
    %27 = vector.shape_cast %26 : vector<2x8x8xf32> to vector<16x8xf32>
    %28 = tpu.concatenate %3, %6, %9, %12, %15, %18, %21, %24, %27 in 1 : vector<16x8xf32>, vector<16x8xf32>, vector<16x8xf32>, vector<16x8xf32>, vector<16x8xf32>, vector<16x8xf32>, vector<16x8xf32>, vector<16x8xf32>, vector<16x8xf32> -> vector<16x72xf32>
    %29 = arith.truncf %28 : vector<16x72xf32> to vector<16x72xbf16>
    %c0_3 = arith.constant 0 : index
    %c0_4 = arith.constant 0 : index
    %30 = vector.load %arg2[%c0_3, %c0_4] : memref<72x384xbf16, #tpu.memory_space<vmem>>, vector<72x384xbf16>
    %cst = arith.constant dense<0.000000e+00> : vector<16x384xf32>
    %31 = tpu.matmul %29, %30, %cst {dimension_numbers = #tpu.dot_dimension_numbers<[1], [0], [0], [1], [0, 0, 1, 1], [], []>} : vector<16x72xbf16>, vector<72x384xbf16>, vector<16x384xf32> -> vector<16x384xf32>
    %c0_5 = arith.constant 0 : index
    %c0_6 = arith.constant 0 : index
    %32 = vector.load %arg3[%c0_5, %c0_6] : memref<1x384xf32, #tpu.memory_space<vmem>>, vector<1x384xf32>
    %33 = vector.broadcast %32 : vector<1x384xf32> to vector<16x384xf32>
    %34 = arith.addf %31, %33 : vector<16x384xf32>
    %cst_7 = arith.constant 0.000000e+00 : f32
    %35 = vector.broadcast %cst_7 : f32 to vector<16x384xf32>
    %36 = arith.maximumf %34, %35 : vector<16x384xf32>
    %37 = arith.truncf %36 : vector<16x384xf32> to vector<16x384xbf16>
    %c0_8 = arith.constant 0 : index
    %c0_9 = arith.constant 0 : index
    %38 = vector.load %arg4[%c0_8, %c0_9] : memref<384x128xbf16, #tpu.memory_space<vmem>>, vector<384x128xbf16>
    %cst_10 = arith.constant dense<0.000000e+00> : vector<16x128xf32>
    %39 = tpu.matmul %37, %38, %cst_10 {dimension_numbers = #tpu.dot_dimension_numbers<[1], [0], [0], [1], [0, 0, 1, 1], [], []>} : vector<16x384xbf16>, vector<384x128xbf16>, vector<16x128xf32> -> vector<16x128xf32>
    %c0_11 = arith.constant 0 : index
    %c0_12 = arith.constant 0 : index
    %40 = vector.load %arg5[%c0_11, %c0_12] : memref<1x128xf32, #tpu.memory_space<vmem>>, vector<1x128xf32>
    %41 = vector.broadcast %40 : vector<1x128xf32> to vector<16x128xf32>
    %42 = arith.addf %39, %41 : vector<16x128xf32>
    %c0_13 = arith.constant 0 : index
    %c0_14 = arith.constant 0 : index
    %43 = vector.load %arg6[%c0_13, %c0_14] : memref<16x128xf32, #tpu.memory_space<vmem>>, vector<16x128xf32>
    tpu.vector_store %arg6[%c0_13, %c0_14], %42 {strides = array<i32>} : memref<16x128xf32, #tpu.memory_space<vmem>>, vector<16x128xf32>,
    return
  }
  func.func @transform_0(%arg0: i32) -> (i32, i32, i32, i32) {
    %c0_i32 = arith.constant 0 : i32
    %c0_i32_0 = arith.constant 0 : i32
    %c0_i32_1 = arith.constant 0 : i32
    %c0_i32_2 = arith.constant 0 : i32
    %c0_i32_3 = arith.constant 0 : i32
    return %c0_i32, %c0_i32_0, %c0_i32_1, %c0_i32_2 : i32, i32, i32, i32
  }
  func.func @transform_1(%arg0: i32) -> (i32, i32) {
    %c0_i32 = arith.constant 0 : i32
    %c0_i32_0 = arith.constant 0 : i32
    %c0_i32_1 = arith.constant 0 : i32
    return %c0_i32, %c0_i32_0 : i32, i32
  }
  func.func @transform_2(%arg0: i32) -> (i32, i32) {
    %c0_i32 = arith.constant 0 : i32
    %c0_i32_0 = arith.constant 0 : i32
    %c0_i32_1 = arith.constant 0 : i32
    return %c0_i32, %c0_i32_0 : i32, i32
  }
  func.func @transform_3(%arg0: i32) -> (i32, i32) {
    %c0_i32 = arith.constant 0 : i32
    %c0_i32_0 = arith.constant 0 : i32
    %c0_i32_1 = arith.constant 0 : i32
    return %c0_i32, %c0_i32_0 : i32, i32
  }
  func.func @transform_4(%arg0: i32) -> (i32, i32) {
    %c0_i32 = arith.constant 0 : i32
    %c0_i32_0 = arith.constant 0 : i32
    %c0_i32_1 = arith.constant 0 : i32
    return %c0_i32, %c0_i32_0 : i32, i32
  }
  func.func @transform_5(%arg0: i32) -> (i32, i32) {
    %c0_i32 = arith.constant 0 : i32
    %c0_i32_0 = arith.constant 0 : i32
    %c0_i32_1 = arith.constant 0 : i32
    return %c0_i32, %c0_i32_0 : i32, i32
  }
}

</mosaic_0001>

<bundles_post_ra>
// kernel: tpu_custom_call.1
= control target key start
LH: loop header
LB: loop body
LE: loop exit
PB: predicated region body
PF: predicated region fallthrough
CT: control target
= control target key end

     0   :  { %10 = vsyncpa [#allocation3], 0  ;;  %s1147_s0 = inlined_call_operand.vmem [shape: f32[2,3,10,8], index: 0, kind: input, shape index: {}]   ;;  %s1148_s1 = inlined_call_operand.vmem [shape: bf16[72,384], index: 1, kind: input, shape index: {}]   ;;  %s1149_s2 = inlined_call_operand.vmem [shape: f32[1,384], index: 2, kind: input, shape index: {}]   ;;  %s1150_s3 = inlined_call_operand.hbm [shape: bf16[384,128], index: 3, kind: input, shape index: {}]   ;;  %s1151_s4 = inlined_call_operand.vmem [shape: f32[1,128], index: 4, kind: input, shape index: {}]   ;;  %s1152_s5 = inlined_call_operand.hbm [shape: f32[16,128], index: 5, kind: output, shape index: {}]  }
   0x1   :  { %11 = vsyncpa [#allocation4], 0  ;;  %s945_s18 = smov [#allocation2]   ;;  %s897_s22 = scalar_lea.hbm %s1150_s3, 3072 }
   0x2   :  { %s23_s19 = sshll.u32 %s945_s18, 4  ;;  %p898_p0 = scmp.ne.s32.totalorder %s1150_s3, %s897_s22  ;;  %s24_s19 = int_to_ptr.vmem [resolvable:$true] %s23_s19 }
   0x3   :  { %p901_p1 = scmp.lt.u32.totalorder %s897_s22, %s1150_s3 }
   0x5   :  { %p903_p2 = pnand %p901_p1, %p898_p0 }
   0x7   :  { %906 = shalt.err (!%p903_p2)
}
   0x8   :  { %s907_s27 = scalar_lea.vmem %s24_s19, 3072  ;;  %p912_p4 = scmp.lt.s32.totalorder %s24_s19, %s24_s19 }
   0x9   :  { %p908_p3 = scmp.ne.s32.totalorder %s24_s19, %s907_s27  ;;  %p913_p5 = scmp.lt.s32.totalorder %s907_s27, %s907_s27 }
   0xb   :  { %p914_p6 = por %p913_p5, %p912_p4 }
   0xd   :  { %p915_p7 = pnand %p914_p6, %p908_p3 }
   0xf   :  { %918 = shalt.err (!%p915_p7)
}
  0x10   :  { %s946_s28 = smov 64   ;;  %s947_s29 = smov 4  }
  0x11   :  { %29 = dma.hbm_to_vmem [thread:$0]  %s1150_s3, 3072, %s24_s19, [#allocation3], %s946_s28, %s946_s28, %s947_s29  }
  0x12   :  { %941 = dma.done.wait [#allocation3], 3072  }
  0x13   :  { %942 = vsyncadd [#allocation3], 4294964224  ;;  %v948_v0 = vmov 0.0   ;;  %vm52_vm0 = vcmask 1046528   ;;  %v38_v1 = vld [vmem:[%s1147_s0 + $0x10] sm:$0xff]  ;;  %v44_v2 = vld [vmem:[%s1147_s0 + $0x40] sm:$0xff] }
  0x14   :  { %765 = vmatprep.subr.bf16.mxu1 %v948_v0  ;;  %v1014_v3 = vld [vmem:[%s1147_s0] sm:$0xff]  ;;  %vm59_vm1 = vcmask 1045504   ;;  %v73_v4 = vrot.slane %v44_v2, 1  ;;  %v79_v5 = vrot.slane %v44_v2, 2  ;;  %v814_v6 = vpack.i.bf16 %v44_v2, %v38_v1  ;;  %v37_v7 = vld [vmem:[%s1147_s0 + $0x8] sm:$0x3] }
  0x15   :  { %v1022_v8 = vld [vmem:[%s1147_s0 + $0x30] sm:$0xff]  ;;  %v70_v9 = vrot.slane %v38_v1, 1  ;;  %v43_v10 = vld [vmem:[%s1147_s0 + $0x38] sm:$0x3]  ;;  %v53_v11 = vrot.slane %v1014_v3, 1  ;;  %v54_v12 = vrot.slane %v37_v7, 1 }
  0x16   :  { %v56_v13 = vrot.slane %v1022_v8, 1  ;;  %s949_s18 = smov 24   ;;  %v57_v14 = vrot.slane %v43_v10, 1  ;;  %v61_v15 = vrot.slane %v37_v7, 2  ;;  %v64_v16 = vrot.slane %v43_v10, 2  ;;  %v40_v17 = vld [vmem:[%s1147_s0 + $0x20] sm:$0xff] }
  0x17   :  { %815 = vrot.lane.b32.xlu1 %v814_v6, %s949_s18  ;;  %v46_v18 = vld [vmem:[%s1147_s0 + $0x50] sm:$0xff]  ;;  %v60_v19 = vrot.slane %v1014_v3, 2  ;;  %v76_v20 = vrot.slane %v38_v1, 2  ;;  %v55_v21 = vsel %vm52_vm0, %v53_v11, %v54_v12  ;;  %v39_v24 = vld [vmem:[%s1147_s0 + $0x18] sm:$0x3]  ;;  %v63_v28 = vrot.slane %v1022_v8, 2 }
  0x18   :  { %v89_v22 = vrot.slane %v46_v18, 1  ;;  %v819_v23 = vpack.i.bf16 %v46_v18, %v40_v17  ;;  %v45_v25 = vld [vmem:[%s1147_s0 + $0x48] sm:$0x3]  ;;  %v58_v26 = vsel %vm52_vm0, %v56_v13, %v57_v14  ;;  %v71_v29 = vrot.slane %v39_v24, 1  ;;  %v47_v31 = vld [vmem:[%s1147_s0 + $0x58] sm:$0x3] }
  0x19   :  { %v62_v27 = vsel %vm59_vm1, %v60_v19, %v61_v15  ;;  %v41_v30 = vld [vmem:[%s1147_s0 + $0x28] sm:$0x3]  ;;  %v824_v32 = vpack.i.bf16 %v58_v26, %v55_v21  ;;  %v74_v33 = vrot.slane %v45_v25, 1  ;;  %v77_v34 = vrot.slane %v39_v24, 2  ;;  %s950_s7 = smov 48   ;;  %s951_s0 = smov 8  }
  0x1a   :  { %v80_v35 = vrot.slane %v45_v25, 2  ;;  %v86_v36 = vrot.slane %v40_v17, 1  ;;  %v65_v37 = vsel %vm59_vm1, %v63_v28, %v64_v16  ;;  %v72_v38 = vsel %vm52_vm0, %v70_v9, %v71_v29  ;;  %v854_v40 = vld [vmem:[%s1148_s1 + $0x4] ss:$12 sps:$4 sm:$0xff]   ;;  %v856_v41 = vld [vmem:[%s1148_s1] ss:$12 sps:$4 sm:$0xff]  }
  0x1b   :  { %820 = vrot.lane.b32.xlu1 %v819_v23, %s950_s7  ;;  %v87_v39 = vrot.slane %v41_v30, 1  ;;  %825 = vrot.lane.b32.xlu0 %v824_v32, %s951_s0  ;;  %v829_v42 = vpack.i.bf16 %v65_v37, %v62_v27  ;;  %v75_v43 = vsel %vm52_vm0, %v73_v4, %v74_v33  ;;  %v857_v44 = vld [vmem:[%s1148_s1 + $0x8] ss:$12 sps:$4 sm:$0xff]   ;;  %v78_v46 = vsel %vm59_vm1, %v76_v20, %v77_v34  ;;  %v860_v50 = vld [vmem:[%s1148_s1 + $0x18] ss:$12 sps:$4 sm:$0xff]   ;;  %s952_s17 = smov 32  }
  0x1c   :  { %v834_v45 = vpack.i.bf16 %v75_v43, %v72_v38  ;;  %v81_v47 = vsel %vm59_vm1, %v79_v5, %v80_v35  ;;  %v90_v48 = vrot.slane %v47_v31, 1  ;;  %292 = vmatprep.subr.bf16.mxu0 %v854_v40  ;;  %v858_v49 = vld [vmem:[%s1148_s1 + $0x1c] ss:$12 sps:$4 sm:$0xff]   ;;  %v92_v51 = vrot.slane %v40_v17, 2  ;;  %766 = vmatpush3.bf16.msra.mxu1 %v857_v44  ;;  %v861_v55 = vld [vmem:[%s1148_s1 + $0x20] ss:$12 sps:$4 sm:$0xff]  }
  0x1d   :  { %v93_v52 = vrot.slane %v41_v30, 2  ;;  %v95_v53 = vrot.slane %v46_v18, 2  ;;  %293 = vmatpush1.bf16.msra.mxu0 %v856_v41  ;;  %v96_v54 = vrot.slane %v47_v31, 2  ;;  %s953_s20 = smov 16   ;;  %v839_v56 = vpack.i.bf16 %v81_v47, %v78_v46  ;;  %767 = vmatprep.subr.bf16.mxu1 %v948_v0  ;;  %v862_v58 = vld [vmem:[%s1148_s1 + $0x34] ss:$12 sps:$4 sm:$0xff]  }
  0x1e   :  { %294 = vmatprep.subr.bf16.mxu0 %v858_v49  ;;  %v88_v59 = vsel %vm52_vm0, %v86_v36, %v87_v39  ;;  %v91_v60 = vsel %vm52_vm0, %v89_v22, %v90_v48  ;;  %v864_v62 = vld [vmem:[%s1148_s1 + $0x30] ss:$12 sps:$4 sm:$0xff]   ;;  %v865_v1 = vld [vmem:[%s1148_s1 + $0x38] ss:$12 sps:$4 sm:$0xff]   ;;  %s954_s30 = smov 40   ;;  %vm282_vm2 = vcmask 1043456  }
  0x1f   :  { %835 = vrot.lane.b32.xlu1 %v834_v45, %s952_s17  ;;  %830 = vrot.lane.b32.xlu0 %v829_v42, %s953_s20  ;;  %v94_v57 = vsel %vm59_vm1, %v92_v51, %v93_v52  ;;  %v97_v61 = vsel %vm59_vm1, %v95_v53, %v96_v54  ;;  %v866_v2 = vld [vmem:[%s1148_s1 + $0x4c] ss:$12 sps:$4 sm:$0xff]   ;;  %v844_v4 = vpack.i.bf16 %v91_v60, %v88_v59  ;;  %v868_v5 = vld [vmem:[%s1148_s1 + $0x48] ss:$12 sps:$4 sm:$0xff]   ;;  %s955_s3 = smov 56   ;;  %v956_v12 = vmov 0  }
  0x20   :  { %v849_v63 = vpack.i.bf16 %v97_v61, %v94_v57  ;;  %768 = vmatpush3.bf16.msra.mxu1 %v861_v55  ;;  %v187_v6 = vld [vmem:[%s1148_s1 + $0x60] sm:$0xff]  ;;  %v869_v7 = vld [vmem:[%s1148_s1 + $0x50] ss:$12 sps:$4 sm:$0xff]   ;;  %v872_v11 = vld [vmem:[%s1148_s1 + $0x68] ss:$0 sps:$4 sm:$0xff]   ;;  %324 = vmatprep.mubr.bf16.mxu0 %v956_v12  ;;  %vm957_vm3 = vmmov 0  }
  0x21   :  { %295 = vmatpush1.bf16.msra.mxu0 %v860_v50  ;;  %769 = vmatprep.subr.bf16.mxu1 %v948_v0  ;;  %v697_v9 = vcombine.low %v187_v6, %v187_v6  ;;  %v698_v10 = vcombine.high %v187_v6, %v187_v6  ;;  %v290_v14 = vsel %vm282_vm2, %v872_v11, 0  ;;  %v874_v15 = vld [vmem:[#allocation2 + $0x40] sm:$0xff]   ;;  %vm146_vm4 = vcmask 64512   ;;  %v877_v57 = vld [vmem:[#allocation2 + $0x48] sm:$0xff]   ;;  %v880_v60 = vld [vmem:[#allocation2 + $0x50] sm:$0xff]   ;;  %s958_s15 = smov [#allocation5]  }
  0x22   :  { %296 = vmatprep.subr.bf16.mxu0 %v862_v58  ;;  %775 = vmatprep.mubr.msk.bf16.mxu1 %vm957_vm3, %v948_v0  ;;  %vm149_vm5 = vcmask 130048   ;;  %vm152_vm6 = vcmask 195584   ;;  %vm155_vm7 = vcmask 261120   ;;  %vm158_vm8 = vcmask 326656   ;;  %v873_v54 = vld [vmem:[#allocation2 + $0x80] sm:$0xff]   ;;  %v876_v58 = vld [vmem:[#allocation2 + $0x88] sm:$0xff]  }
  0x23   :  { %840 = vrot.lane.b32.xlu0 %v839_v56, %s954_s30  ;;  %850 = vrot.lane.b32.xlu1 %v849_v63, %s946_s28  ;;  %v284_v13 = vsel %vm282_vm2, %v697_v9, 0  ;;  %vm161_vm9 = vcmask 392192   ;;  %vm164_vm10 = vcmask 457728   ;;  %vm167_vm11 = vcmask 523264   ;;  %v875_v55 = vld [vmem:[#allocation2] sm:$0xff]   ;;  %v878_v59 = vld [vmem:[#allocation2 + $0x8] sm:$0xff]  }
  0x24   :  { %770 = vmatpush3.bf16.msra.mxu1 %v865_v1  ;;  %vm278_vm12 = vcmask 588800   ;;  %v879_v61 = vld [vmem:[#allocation2 + $0x90] sm:$0xff]   ;;  %v883_v63 = vld [vmem:[#allocation2 + $0x58] sm:$0xff]   ;;  %v887_v6 = vld [vmem:[#allocation2 + $0x20] sm:$0xff]   ;;  %s673_s16 = sshll.u32 %s958_s15, 4  ;;  %s674_s16 = int_to_ptr.vmem [resolvable:$true] %s673_s16 }
  0x25   :  { %297 = vmatpush1.bf16.msra.mxu0 %v864_v62  ;;  %771 = vmatprep.subr.bf16.mxu1 %v948_v0  ;;  %v881_v62 = vld [vmem:[#allocation2 + $0x10] sm:$0xff]   ;;  %v882_v1 = vld [vmem:[#allocation2 + $0x98] sm:$0xff]   ;;  %v888_v9 = vld [vmem:[#allocation2 + $0xa8] sm:$0xff]   ;;  %s919_s17 = scalar_lea.vmem %s674_s16, 256  ;;  %p924_p9 = scmp.lt.s32.totalorder %s674_s16, %s674_s16 }
  0x26   :  { %298 = vmatprep.subr.bf16.mxu0 %v866_v2  ;;  %v884_v2 = vld [vmem:[#allocation2 + $0x18] sm:$0xff]   ;;  %v891_v11 = vld [vmem:[#allocation2 + $0xb0] sm:$0xff]   ;;  %p920_p8 = scmp.ne.s32.totalorder %s674_s16, %s919_s17  ;;  %p925_p10 = scmp.lt.s32.totalorder %s919_s17, %s919_s17 }
  0x27   :  { %845 = vrot.lane.b32.xlu0 %v844_v4, %s955_s3  ;;  %v886_v4 = vld [vmem:[#allocation2 + $0x60] sm:$0xff]   ;;  %v892_v12 = vld [vmem:[#allocation2 + $0x70] sm:$0xff]  }
  0x28   :  { %772 = vmatpush3.bf16.msra.mxu1 %v869_v7  ;;  %v889_v7 = vld [vmem:[#allocation2 + $0x68] sm:$0xff]   ;;  %p926_p11 = por %p925_p10, %p924_p9 }
  0x29   :  { %299 = vmatpush1.bf16.msra.mxu0 %v868_v5  ;;  %773 = vmatprep.subr.bf16.mxu1 %v948_v0  ;;  %v885_v5 = vld [vmem:[#allocation2 + $0xa0] sm:$0xff]  }
  0x2a   :  { %700 = vmatprep.subr.msk.bf16.mxu0 %vm282_vm2, %v698_v10  ;;  %v890_v10 = vld [vmem:[#allocation2 + $0x28] sm:$0xff]   ;;  %p927_p12 = pnand %p926_p11, %p920_p8 }
  0x2c   :  { %774 = vmatpush3.bf16.msra.mxu1 %v290_v14  ;;  %v894_v14 = vld [vmem:[#allocation2 + $0xb8] sm:$0xff]  }
  0x2d   :  { %301 = vmatpush1.bf16.msra.mxu0 %v284_v13  ;;  %779 = vmatprep.subr.bf16.mxu1 %v948_v0  ;;  %v893_v13 = vld [vmem:[#allocation2 + $0x30] sm:$0xff]  }
  0x2e   :  { %734 = vmatprep.subr.bf16.mxu0 %v874_v15  ;;  %v895_v15 = vld [vmem:[#allocation2 + $0x78] sm:$0xff]  }
  0x89   :  { %v816_v16 = vpop.permute.xlu1 %815 }
  0x8a   :  { %v818_v27 = vunpack.i.h.bf16 %v816_v16  ;;  %v817_v28 = vunpack.i.l.bf16 %v816_v16  ;;  %v896_v16 = vld [vmem:[#allocation2 + $0x38] sm:$0xff]  }
  0x8d   :  { %v821_v17 = vpop.permute.xlu1 %820  ;;  %v826_v18 = vpop.permute.xlu0 %825 }
  0x8e   :  { %v828_v19 = vunpack.i.h.bf16 %v826_v18  ;;  %v827_v20 = vunpack.i.l.bf16 %v826_v18  ;;  %v822_v43 = vunpack.i.l.bf16 %v821_v17 }
  0x90   :  { %v148_v29 = vsel %vm146_vm4, %v1022_v8, %v828_v19  ;;  %v147_v30 = vsel %vm146_vm4, %v1014_v3, %v827_v20  ;;  %v823_v8 = vunpack.i.h.bf16 %v821_v17  ;;  %v191_v17 = vlaneseq }
  0x91   :  { %v836_v21 = vpop.permute.xlu1 %835  ;;  %v831_v22 = vpop.permute.xlu0 %830 }
  0x92   :  { %v833_v23 = vunpack.i.h.bf16 %v831_v22  ;;  %v832_v24 = vunpack.i.l.bf16 %v831_v22  ;;  %v838_v25 = vunpack.i.h.bf16 %v836_v21  ;;  %v837_v26 = vunpack.i.l.bf16 %v836_v21  ;;  %v189_v21 = vld [vmem:[%s1149_s2] sm:$0x7] }
  0x93   :  { %v192_v18 = vshrl.u32 %v191_v17, 7 }
  0x94   :  { %v150_v31 = vsel %vm149_vm5, %v147_v30, %v832_v24  ;;  %v151_v32 = vsel %vm149_vm5, %v148_v29, %v833_v23 }
  0x95   :  { %v153_v33 = vsel %vm152_vm6, %v150_v31, %v817_v28  ;;  %v154_v34 = vsel %vm152_vm6, %v151_v32, %v818_v27  ;;  %v841_v35 = vpop.permute.xlu0 %840  ;;  %v851_v40 = vpop.permute.xlu1 %850  ;;  %v193_v19 = vsub.s32 0, %v192_v18  ;;  %v201_v20 = vsub.s32 2, %v192_v18 }
  0x96   :  { %v156_v36 = vsel %vm155_vm7, %v153_v33, %v837_v26  ;;  %v157_v37 = vsel %vm155_vm7, %v154_v34, %v838_v25  ;;  %v843_v38 = vunpack.i.h.bf16 %v841_v35  ;;  %v842_v39 = vunpack.i.l.bf16 %v841_v35 }
  0x97   :  { %v853_v44 = vunpack.i.h.bf16 %v851_v40  ;;  %v852_v45 = vunpack.i.l.bf16 %v851_v40  ;;  %v197_v22 = vsub.s32 1, %v192_v18  ;;  %v194_v23 = vrot.slane %v189_v21, %v193_v19 }
  0x98   :  { %v159_v41 = vsel %vm158_vm8, %v156_v36, %v842_v39  ;;  %v160_v42 = vsel %vm158_vm8, %v157_v37, %v843_v38  ;;  %v202_v24 = vrot.slane %v189_v21, %v201_v20 }
  0x99   :  { %v846_v3 = vpop.permute.xlu0 %845  ;;  %v162_v48 = vsel %vm161_vm9, %v159_v41, %v822_v43  ;;  %v163_v49 = vsel %vm161_vm9, %v160_v42, %v823_v8  ;;  %v198_v25 = vrot.slane %v189_v21, %v197_v22 }
  0x9a   :  { %v848_v46 = vunpack.i.h.bf16 %v846_v3  ;;  %v847_v47 = vunpack.i.l.bf16 %v846_v3 }
  0x9c   :  { %v165_v50 = vsel %vm164_vm10, %v162_v48, %v847_v47  ;;  %v166_v51 = vsel %vm164_vm10, %v163_v49, %v848_v46 }
  0x9d   :  { %v168_v52 = vsel %vm167_vm11, %v165_v50, %v852_v45  ;;  %v169_v53 = vsel %vm167_vm11, %v166_v51, %v853_v44  ;;  %v703_v50 = vld [vmem:[%s1151_s4] ss:$0 sm:$0xff] }
  0x9e   :  { %v170_v56 = vpack.c.bf16 %v169_v53, %v168_v52 }
  0xa0   :  { %701 = vmatmul.mubr.msk.bf16.vlgmr.msra.gmra.mrb[0].mxu0 %vm278_vm12, %v170_v56  ;;  %776 = vmatmul.mubr.msk.bf16.vlgmr.msra.gmra.mrb[0].mxu1 %vm278_vm12, %v170_v56 }
  0xa1   :  { %780 = vmatpush3.bf16.msra.mxu1 %v873_v54  ;;  %735 = vmatpush3.bf16.msra.mxu0 %v875_v55 }
  0xa2   :  { %781 = vmatprep.subr.bf16.mxu1 %v948_v0  ;;  %736 = vmatprep.subr.bf16.mxu0 %v877_v57 }
  0xa3   :  { %795 = vmatprep.mubr.msk.bf16.mxu1 %vm957_vm3, %v948_v0 }
  0xa5   :  { %782 = vmatpush3.bf16.msra.mxu1 %v876_v58  ;;  %737 = vmatpush3.bf16.msra.mxu0 %v878_v59 }
  0xa6   :  { %783 = vmatprep.subr.bf16.mxu1 %v948_v0  ;;  %738 = vmatprep.subr.bf16.mxu0 %v880_v60 }
  0xa9   :  { %784 = vmatpush3.bf16.msra.mxu1 %v879_v61  ;;  %739 = vmatpush3.bf16.msra.mxu0 %v881_v62 }
  0xaa   :  { %785 = vmatprep.subr.bf16.mxu1 %v948_v0  ;;  %740 = vmatprep.subr.bf16.mxu0 %v883_v63 }
  0xad   :  { %786 = vmatpush3.bf16.msra.mxu1 %v882_v1  ;;  %741 = vmatpush3.bf16.msra.mxu0 %v884_v2 }
  0xae   :  { %787 = vmatprep.subr.bf16.mxu1 %v948_v0  ;;  %742 = vmatprep.subr.bf16.mxu0 %v886_v4 }
  0xb1   :  { %788 = vmatpush3.bf16.msra.mxu1 %v885_v5  ;;  %743 = vmatpush3.bf16.msra.mxu0 %v887_v6 }
  0xb2   :  { %789 = vmatprep.subr.bf16.mxu1 %v948_v0  ;;  %744 = vmatprep.subr.bf16.mxu0 %v889_v7 }
  0xb5   :  { %790 = vmatpush3.bf16.msra.mxu1 %v888_v9  ;;  %745 = vmatpush3.bf16.msra.mxu0 %v890_v10 }
  0xb6   :  { %791 = vmatprep.subr.bf16.mxu1 %v948_v0  ;;  %746 = vmatprep.subr.bf16.mxu0 %v892_v12 }
  0xb9   :  { %792 = vmatpush3.bf16.msra.mxu1 %v891_v11  ;;  %747 = vmatpush3.bf16.msra.mxu0 %v893_v13 }
  0xba   :  { %793 = vmatprep.subr.bf16.mxu1 %v948_v0  ;;  %748 = vmatprep.subr.bf16.mxu0 %v895_v15 }
  0xbd   :  { %794 = vmatpush3.bf16.msra.mxu1 %v894_v14  ;;  %749 = vmatpush3.bf16.msra.mxu0 %v896_v16 }
 0x173   :  { %v326_v0 = vpop.f32.mrb[0].mxu0  ;;  %v369_v26 = vpop.f32.mrb[0].mxu1 }
 0x174   :  { %v327_v27 = vadd.f32 %v326_v0, %v194_v23  ;;  %v370_v28 = vadd.f32 %v369_v26, %v202_v24  ;;  %v328_v29 = vpop.f32.mrb[1].mxu0  ;;  %v777_v30 = vpop.f32.mrb[1].mxu1 }
 0x175   :  { %v329_v31 = vadd.f32 %v328_v29, %v198_v25  ;;  %v330_v32 = vpop.f32.mrb[2].mxu0  ;;  %v372_v33 = vpop.f32.mrb[2].mxu1 }
 0x176   :  { %v331_v34 = vadd.f32 %v330_v32, %v194_v23  ;;  %v373_v35 = vadd.f32 %v372_v33, %v202_v24  ;;  %v332_v36 = vpop.f32.mrb[3].mxu0  ;;  %v778_v37 = vpop.f32.mrb[3].mxu1  ;;  %v376_v39 = vmax.f32 %v327_v27, 0.0  ;;  %v378_v40 = vmax.f32 %v370_v28, 0.0 }
 0x177   :  { %v333_v38 = vadd.f32 %v332_v36, %v198_v25  ;;  %v377_v8 = vmax.f32 %v329_v31, 0.0 }
 0x178   :  { %v379_v41 = vmax.f32 %v331_v34, 0.0  ;;  %v381_v42 = vmax.f32 %v373_v35, 0.0 }
 0x179   :  { %v380_v43 = vmax.f32 %v333_v38, 0.0 }
 0x17a   :  { %v382_v3 = vpack.c.bf16 %v379_v41, %v376_v39  ;;  %v384_v44 = vpack.c.bf16 %v381_v42, %v378_v40 }
 0x17b   :  { %v383_v45 = vpack.c.bf16 %v380_v43, %v377_v8 }
 0x17c   :  { %796 = vmatmul.mubr.bf16.vlgmr.msra.gmra.mrb[4].mxu1 %v384_v44 }
 0x17d   :  { %616 = vmatprep.mubr.bf16.mxu0 %v383_v45 }
 0x17e   :  { %617 = vmatmul.mubr.bf16.vlgmr.msra.gmra.mrb[4].mxu0 %v382_v3 }
 0x24f   :  { %v659_v46 = vpop.f32.mrb[4].mxu1 }
 0x250   :  { %v797_v47 = vpop.f32.mrb[5].mxu1 }
 0x251   :  { %v750_v48 = vpop.f32.mrb[4].mxu0  ;;  %v662_v49 = vpop.f32.mrb[6].mxu1 }
 0x252   :  { %v751_v51 = vpop.f32.mrb[5].mxu0  ;;  %v798_v52 = vpop.f32.mrb[7].mxu1 }
 0x253   :  { %v752_v53 = vadd.f32 %v751_v51, %v750_v48  ;;  %v753_v54 = vpop.f32.mrb[6].mxu0 }
 0x254   :  { %v754_v55 = vpop.f32.mrb[7].mxu0 }
 0x255   :  { %v619_v56 = vadd.f32 %v752_v53, %v703_v50  ;;  %v755_v57 = vadd.f32 %v754_v55, %v753_v54 }
 0x257   :  { %v660_v58 = vadd.f32 %v659_v46, %v619_v56  ;;  %v622_v59 = vadd.f32 %v755_v57, %v703_v50 }
 0x259   :  { %666 = vst [vmem:[#allocation5] sm:$0xff] %v660_v58  ;;  %v663_v60 = vadd.f32 %v662_v49, %v622_v59 }
 0x25b   :  { %667 = vst [vmem:[#allocation5 + $0x8] sm:$0xff] %v663_v60 }
 0x25c   :  { %930 = shalt.err (!%p927_p12)
}
 0x25d   :  { %s931_s19 = scalar_lea.hbm %s1152_s5, 256 }
 0x25e   :  { %p932_p13 = scmp.ne.s32.totalorder %s1152_s5, %s931_s19  ;;  %p935_p0 = scmp.lt.u32.totalorder %s931_s19, %s1152_s5 }
 0x260   :  { %p937_p1 = pnand %p935_p0, %p932_p13 }
 0x262   :  { %940 = shalt.err (!%p937_p1)
}
 0x263   :  { %s959_s24 = smov 128  }
 0x264   :  { %679 = dma.vmem_to_hbm [thread:$0]  %s674_s16, 256, %s1152_s5, [#allocation4], %s959_s24, %s959_s24, %s951_s0  }
 0x265   :  { %943 = dma.done.wait [#allocation4], 256  }
 0x266   :  { %944 = vsyncadd [#allocation4], 4294967040 }
 0x267   :  { %683 = vsyncpa [#allocation3], 1 }
 0x268   :  { %684 = vsyncpa [#allocation4], 1 }

</bundles_post_ra>
